<compile_context>
chip_gen: v7x
topology: tpu7x:2x2x1
jax: 0.10.0
libtpu: 0.0.40
codegen_flags: <defaults>
</compile_context>

<pallas_src>
import jax
import jax.numpy as jnp
from jax.experimental import pallas as pl
from jax.experimental.pallas import tpu as pltpu  # noqa: F401  (TPU backend namespace)


# ---------------------------------------------------------------------------
# Fused Pallas kernel: layer1 + sigmoid + layer2 + tanh + residual add
# ---------------------------------------------------------------------------
def _transition_delta_kernel(z_ref, a_ref, w1z_ref, w1a_ref, b1_ref,
                             w2_ref, b2_ref, delta_ref, tpred_ref):
    z = z_ref[...]
    # layer1 applied to the (virtual) concatenation [z, action]:
    # the concat never materializes -- the weight was pre-split at init.
    h = jnp.dot(z, w1z_ref[...], preferred_element_type=jnp.float32)
    h = h + jnp.dot(a_ref[...], w1a_ref[...], preferred_element_type=jnp.float32)
    h = jax.nn.sigmoid(h + b1_ref[...])                       # EUP transcendental
    d = jnp.dot(h, w2_ref[...], preferred_element_type=jnp.float32)
    d = jnp.tanh(d + b2_ref[...])                             # EUP transcendental
    delta_ref[...] = d.astype(delta_ref.dtype)
    tpred_ref[...] = (z + d).astype(tpred_ref.dtype)          # t_pred = z + delta_z


def transition_delta_forward(params, z, action):
    """forward(z [B, code], action [B, act]) -> (delta_z, t_pred), both [B, code]."""
    B, code = z.shape
    _, act = action.shape
    hidden = params["w2"].shape[0]

    return pl.pallas_call(
        _transition_delta_kernel,
        out_shape=(
            jax.ShapeDtypeStruct((B, code), z.dtype),
            jax.ShapeDtypeStruct((B, code), z.dtype),
        ),
        grid=(1,),
        in_specs=[
            pl.BlockSpec((B, code), lambda i: (0, 0)),        # z
            pl.BlockSpec((B, act), lambda i: (0, 0)),         # action
            pl.BlockSpec((code, hidden), lambda i: (0, 0)),   # w1 rows for z
            pl.BlockSpec((act, hidden), lambda i: (0, 0)),    # w1 rows for action
            pl.BlockSpec((1, hidden), lambda i: (0, 0)),      # b1
            pl.BlockSpec((hidden, code), lambda i: (0, 0)),   # w2
            pl.BlockSpec((1, code), lambda i: (0, 0)),        # b2
        ],
        out_specs=(
            pl.BlockSpec((B, code), lambda i: (0, 0)),        # delta_z
            pl.BlockSpec((B, code), lambda i: (0, 0)),        # t_pred
        ),
    )(z, action, params["w1z"], params["w1a"], params["b1"],
      params["w2"], params["b2"])


# ---------------------------------------------------------------------------
# Parameter setup (deterministic; PyTorch nn.Linear-style uniform init)
# ---------------------------------------------------------------------------
def init_params(key, code_size, action_size):
    input_size = code_size + action_size
    hidden = input_size * 2                    # layer1: input_size -> input_size * 2
    k1, k2, k3, k4 = jax.random.split(key, 4)

    s1 = 1.0 / jnp.sqrt(jnp.float32(input_size))
    w1 = jax.random.uniform(k1, (input_size, hidden), jnp.float32, -s1, s1)
    b1 = jax.random.uniform(k2, (1, hidden), jnp.float32, -s1, s1)

    s2 = 1.0 / jnp.sqrt(jnp.float32(hidden))
    w2 = jax.random.uniform(k3, (hidden, code_size), jnp.float32, -s2, s2)
    b2 = jax.random.uniform(k4, (1, code_size), jnp.float32, -s2, s2)

    return {
        # layer1 weight pre-split so the kernel never needs torch.cat((z, action)).
        "w1z": w1[:code_size],
        "w1a": w1[code_size:],
        "b1": b1,
        "w2": w2,
        "b2": b2,
    }


# ---------------------------------------------------------------------------
# Driver
# ---------------------------------------------------------------------------
if __name__ == "__main__":
    B = 2
    CODE_SIZE = 10
    ACTION_SIZE = 4

    key = jax.random.PRNGKey(0)
    k_par, k_z, k_a = jax.random.split(key, 3)

    params = init_params(k_par, CODE_SIZE, ACTION_SIZE)

    z = jax.random.normal(k_z, (B, CODE_SIZE), jnp.float32)
    action_idx = jax.random.randint(k_a, (B,), 0, ACTION_SIZE)
    action = jax.nn.one_hot(action_idx, ACTION_SIZE, dtype=jnp.float32)

    fwd = jax.jit(transition_delta_forward)
    delta_z, t_pred = fwd(params, z, action)
    jax.block_until_ready((delta_z, t_pred))

    # Pure-JAX reference of the PyTorch forward for a correctness check.
    cat = jnp.concatenate([z, action], axis=-1)
    w1_full = jnp.concatenate([params["w1z"], params["w1a"]], axis=0)
    h_ref = jax.nn.sigmoid(cat @ w1_full + params["b1"])
    delta_ref = jnp.tanh(h_ref @ params["w2"] + params["b2"])
    tpred_ref = z + delta_ref

    assert delta_z.shape == (B, CODE_SIZE)
    assert t_pred.shape == (B, CODE_SIZE)
    assert jnp.allclose(delta_z, delta_ref, atol=1e-5, rtol=1e-5)
    assert jnp.allclose(t_pred, tpred_ref, atol=1e-5, rtol=1e-5)
    print("KERNEL_OK")
</pallas_src>

<mosaic_0001>
module attributes {stable_mosaic.version = 11 : i64} {
  func.func @_transition_delta_kernel(%arg0: i32, %arg1: memref<2x10xf32, #tpu.memory_space<vmem>>, %arg2: memref<2x4xf32, #tpu.memory_space<vmem>>, %arg3: memref<10x28xf32, #tpu.memory_space<vmem>>, %arg4: memref<4x28xf32, #tpu.memory_space<vmem>>, %arg5: memref<1x28xf32, #tpu.memory_space<vmem>>, %arg6: memref<28x10xf32, #tpu.memory_space<vmem>>, %arg7: memref<1x10xf32, #tpu.memory_space<vmem>>, %arg8: memref<2x10xf32, #tpu.memory_space<vmem>>, %arg9: memref<2x10xf32, #tpu.memory_space<vmem>>) attributes {dimension_semantics = [#tpu.dimension_semantics<arbitrary>], iteration_bounds = array<i64: 1>, scalar_prefetch = 0 : i64, scratch_operands = 0 : i64, tpu.core_type = #tpu.core_type<tc>, window_params = [{pipeline_mode = #tpu.pipeline_mode<synchronous>, transform_indices = @transform_0, window_bounds = array<i64: 2, 10>}, {pipeline_mode = #tpu.pipeline_mode<synchronous>, transform_indices = @transform_1, window_bounds = array<i64: 2, 4>}, {pipeline_mode = #tpu.pipeline_mode<synchronous>, transform_indices = @transform_2, window_bounds = array<i64: 10, 28>}, {pipeline_mode = #tpu.pipeline_mode<synchronous>, transform_indices = @transform_3, window_bounds = array<i64: 4, 28>}, {pipeline_mode = #tpu.pipeline_mode<synchronous>, transform_indices = @transform_4, window_bounds = array<i64: 1, 28>}, {pipeline_mode = #tpu.pipeline_mode<synchronous>, transform_indices = @transform_5, window_bounds = array<i64: 28, 10>}, {pipeline_mode = #tpu.pipeline_mode<synchronous>, transform_indices = @transform_6, window_bounds = array<i64: 1, 10>}, {pipeline_mode = #tpu.pipeline_mode<synchronous>, transform_indices = @transform_7, window_bounds = array<i64: 2, 10>}, {pipeline_mode = #tpu.pipeline_mode<synchronous>, transform_indices = @transform_8, window_bounds = array<i64: 2, 10>}]} {
    %c0 = arith.constant 0 : index
    %c0_0 = arith.constant 0 : index
    %0 = vector.load %arg1[%c0, %c0_0] : memref<2x10xf32, #tpu.memory_space<vmem>>, vector<2x10xf32>
    %c0_1 = arith.constant 0 : index
    %c0_2 = arith.constant 0 : index
    %1 = vector.load %arg3[%c0_1, %c0_2] : memref<10x28xf32, #tpu.memory_space<vmem>>, vector<10x28xf32>
    %cst = arith.constant dense<0.000000e+00> : vector<2x28xf32>
    %2 = tpu.matmul %0, %1, %cst {dimension_numbers = #tpu.dot_dimension_numbers<[1], [0], [0], [1], [0, 0, 1, 1], [], []>} : vector<2x10xf32>, vector<10x28xf32>, vector<2x28xf32> -> vector<2x28xf32>
    %c0_3 = arith.constant 0 : index
    %c0_4 = arith.constant 0 : index
    %3 = vector.load %arg2[%c0_3, %c0_4] : memref<2x4xf32, #tpu.memory_space<vmem>>, vector<2x4xf32>
    %c0_5 = arith.constant 0 : index
    %c0_6 = arith.constant 0 : index
    %4 = vector.load %arg4[%c0_5, %c0_6] : memref<4x28xf32, #tpu.memory_space<vmem>>, vector<4x28xf32>
    %cst_7 = arith.constant dense<0.000000e+00> : vector<2x28xf32>
    %5 = tpu.matmul %3, %4, %cst_7 {dimension_numbers = #tpu.dot_dimension_numbers<[1], [0], [0], [1], [0, 0, 1, 1], [], []>} : vector<2x4xf32>, vector<4x28xf32>, vector<2x28xf32> -> vector<2x28xf32>
    %6 = arith.addf %2, %5 : vector<2x28xf32>
    %c0_8 = arith.constant 0 : index
    %c0_9 = arith.constant 0 : index
    %7 = vector.load %arg5[%c0_8, %c0_9] : memref<1x28xf32, #tpu.memory_space<vmem>>, vector<1x28xf32>
    %8 = vector.broadcast %7 : vector<1x28xf32> to vector<2x28xf32>
    %9 = arith.addf %6, %8 : vector<2x28xf32>
    %10 = arith.negf %9 : vector<2x28xf32>
    %11 = math.exp %10 : vector<2x28xf32>
    %cst_10 = arith.constant 1.000000e+00 : f32
    %12 = vector.broadcast %cst_10 : f32 to vector<2x28xf32>
    %13 = arith.addf %12, %11 : vector<2x28xf32>
    %14 = arith.divf %12, %13 : vector<2x28xf32>
    %c0_11 = arith.constant 0 : index
    %c0_12 = arith.constant 0 : index
    %15 = vector.load %arg6[%c0_11, %c0_12] : memref<28x10xf32, #tpu.memory_space<vmem>>, vector<28x10xf32>
    %cst_13 = arith.constant dense<0.000000e+00> : vector<2x10xf32>
    %16 = tpu.matmul %14, %15, %cst_13 {dimension_numbers = #tpu.dot_dimension_numbers<[1], [0], [0], [1], [0, 0, 1, 1], [], []>} : vector<2x28xf32>, vector<28x10xf32>, vector<2x10xf32> -> vector<2x10xf32>
    %c0_14 = arith.constant 0 : index
    %c0_15 = arith.constant 0 : index
    %17 = vector.load %arg7[%c0_14, %c0_15] : memref<1x10xf32, #tpu.memory_space<vmem>>, vector<1x10xf32>
    %18 = vector.broadcast %17 : vector<1x10xf32> to vector<2x10xf32>
    %19 = arith.addf %16, %18 : vector<2x10xf32>
    %20 = math.tanh %19 : vector<2x10xf32>
    %c0_16 = arith.constant 0 : index
    %c0_17 = arith.constant 0 : index
    %21 = vector.load %arg8[%c0_16, %c0_17] : memref<2x10xf32, #tpu.memory_space<vmem>>, vector<2x10xf32>
    tpu.vector_store %arg8[%c0_16, %c0_17], %20 {strides = array<i32>} : memref<2x10xf32, #tpu.memory_space<vmem>>, vector<2x10xf32>,
    %22 = arith.addf %0, %20 : vector<2x10xf32>
    %c0_18 = arith.constant 0 : index
    %c0_19 = arith.constant 0 : index
    %23 = vector.load %arg9[%c0_18, %c0_19] : memref<2x10xf32, #tpu.memory_space<vmem>>, vector<2x10xf32>
    tpu.vector_store %arg9[%c0_18, %c0_19], %22 {strides = array<i32>} : memref<2x10xf32, #tpu.memory_space<vmem>>, vector<2x10xf32>,
    return
  }
  func.func @transform_0(%arg0: i32) -> (i32, i32) {
    %c0_i32 = arith.constant 0 : i32
    %c0_i32_0 = arith.constant 0 : i32
    %c0_i32_1 = arith.constant 0 : i32
    return %c0_i32, %c0_i32_0 : i32, i32
  }
  func.func @transform_1(%arg0: i32) -> (i32, i32) {
    %c0_i32 = arith.constant 0 : i32
    %c0_i32_0 = arith.constant 0 : i32
    %c0_i32_1 = arith.constant 0 : i32
    return %c0_i32, %c0_i32_0 : i32, i32
  }
  func.func @transform_2(%arg0: i32) -> (i32, i32) {
    %c0_i32 = arith.constant 0 : i32
    %c0_i32_0 = arith.constant 0 : i32
    %c0_i32_1 = arith.constant 0 : i32
    return %c0_i32, %c0_i32_0 : i32, i32
  }
  func.func @transform_3(%arg0: i32) -> (i32, i32) {
    %c0_i32 = arith.constant 0 : i32
    %c0_i32_0 = arith.constant 0 : i32
    %c0_i32_1 = arith.constant 0 : i32
    return %c0_i32, %c0_i32_0 : i32, i32
  }
  func.func @transform_4(%arg0: i32) -> (i32, i32) {
    %c0_i32 = arith.constant 0 : i32
    %c0_i32_0 = arith.constant 0 : i32
    %c0_i32_1 = arith.constant 0 : i32
    return %c0_i32, %c0_i32_0 : i32, i32
  }
  func.func @transform_5(%arg0: i32) -> (i32, i32) {
    %c0_i32 = arith.constant 0 : i32
    %c0_i32_0 = arith.constant 0 : i32
    %c0_i32_1 = arith.constant 0 : i32
    return %c0_i32, %c0_i32_0 : i32, i32
  }
  func.func @transform_6(%arg0: i32) -> (i32, i32) {
    %c0_i32 = arith.constant 0 : i32
    %c0_i32_0 = arith.constant 0 : i32
    %c0_i32_1 = arith.constant 0 : i32
    return %c0_i32, %c0_i32_0 : i32, i32
  }
  func.func @transform_7(%arg0: i32) -> (i32, i32) {
    %c0_i32 = arith.constant 0 : i32
    %c0_i32_0 = arith.constant 0 : i32
    %c0_i32_1 = arith.constant 0 : i32
    return %c0_i32, %c0_i32_0 : i32, i32
  }
  func.func @transform_8(%arg0: i32) -> (i32, i32) {
    %c0_i32 = arith.constant 0 : i32
    %c0_i32_0 = arith.constant 0 : i32
    %c0_i32_1 = arith.constant 0 : i32
    return %c0_i32, %c0_i32_0 : i32, i32
  }
}

</mosaic_0001>

<bundles_post_ra>
// kernel: transition_delta_forward.1
= control target key start
LH: loop header
LB: loop body
LE: loop exit
PB: predicated region body
PF: predicated region fallthrough
CT: control target
= control target key end

     0   :  { %14 = vsyncpa [#allocation3], 0  ;;  %vm39_vm0 = vcmask 1043456   ;;  %vm117_vm1 = vcmask 1041408   ;;  %v439_v1 = vmov 0.0   ;;  %vm440_vm2 = vmmov 1   ;;  %s561_s0 = inlined_call_operand.vmem [shape: f32[2,10], index: 0, kind: input, shape index: {}]   ;;  %s562_s1 = inlined_call_operand.vmem [shape: f32[2,4], index: 1, kind: input, shape index: {}]   ;;  %s563_s2 = inlined_call_operand.vmem [shape: f32[10,28], index: 2, kind: input, shape index: {}]   ;;  %s564_s3 = inlined_call_operand.vmem [shape: f32[4,28], index: 3, kind: input, shape index: {}]   ;;  %s565_s4 = inlined_call_operand.vmem [shape: f32[1,28], index: 4, kind: input, shape index: {}]   ;;  %s566_s5 = inlined_call_operand.vmem [shape: f32[28,10], index: 5, kind: input, shape index: {}]   ;;  %s567_s6 = inlined_call_operand.vmem [shape: f32[1,10], index: 6, kind: input, shape index: {}]   ;;  %s568_s7 = inlined_call_operand.hbm [shape: f32[2,10], index: 7, kind: output, shape index: {0}]   ;;  %s569_s8 = inlined_call_operand.hbm [shape: f32[2,10], index: 8, kind: output, shape index: {1}]  }
   0x1   :  { %v34_v0 = vld [vmem:[%s564_s3] sm:$0xf]  ;;  %345 = vmatprep.subr.mxu1 %v439_v1  ;;  %vm493_vm3 = vmpackc.low %vm117_vm1, %vm440_vm2  ;;  %vm35_vm4 = vcmask 31744   ;;  %vm441_vm6 = vmmov 0   ;;  %v32_v6 = vld [vmem:[%s563_s2 + $0x8] sm:$0x3] }
   0x2   :  { %v33_v3 = vld [vmem:[%s562_s1] sm:$0x3]  ;;  %346 = vmatpush3.msk.msra.mxu1 %vm39_vm0, %v34_v0  ;;  %vm503_vm5 = vmpackc.low %vm39_vm0, %vm440_vm2  ;;  %347 = vmatprep.mubr.msk.f32.mxu1 %vm441_vm6, %v439_v1  ;;  %v442_v7 = vmov 0.0|0.0  }
   0x3   :  { %v31_v4 = vld [vmem:[%s563_s2] sm:$0xff]  ;;  %348 = vmatmul.mubr.msk.f32.vlgmr.msra.gmra.mrb[0].mxu1 %vm35_vm4, %v33_v3  ;;  %368 = vmatprep.subr.bf16.mxu1 %v442_v7 }
   0x4   :  { %v369_v8 = vpack.c.bf16 %v32_v6, %v31_v4 }
   0x5   :  { %15 = vsyncpa [#allocation5], 0  ;;  %354 = vmatprep.mubr.msk.f32.mxu1 %vm441_vm6, %v439_v1  ;;  %372 = vmatprep.subr.bf16.mxu0 %v442_v7  ;;  %v30_v9 = vld [vmem:[%s561_s0] sm:$0x3]  ;;  %vm113_vm7 = vcmask 80896   ;;  %v206_v11 = vld [vmem:[%s566_s5 + $0x8] sm:$0xff] }
   0x6   :  { %371 = vmatpush3.bf16.msk.msra.mxu1 %vm493_vm3, %v369_v8  ;;  %365 = vmatprep.mubr.msk.f32.mxu0 %vm441_vm6, %v439_v1  ;;  %v205_v10 = vld [vmem:[%s566_s5] sm:$0xff]  ;;  %v207_v12 = vld [vmem:[%s566_s5 + $0x10] sm:$0xff]  ;;  %v208_v14 = vld [vmem:[%s566_s5 + $0x18] sm:$0xf]  ;;  %vm216_vm8 = vcmask 228352   ;;  %vm294_vm9 = vcmask 74752  }
   0x7   :  { %v373_v13 = vpack.c.bf16 %v206_v11, %v205_v10  ;;  %v376_v15 = vpack.c.bf16 %v208_v14, %v207_v12  ;;  %v330_v19 = vld [vmem:[%s565_s4] ss:$0 sm:$0xff]  ;;  %s443_s4 = smov [#allocation2]   ;;  %s444_s23 = smov [#allocation4]  }
   0x8   :  { %v332_v27 = vld [vmem:[%s567_s6] ss:$0 sm:$0xff]  ;;  %s304_s22 = sshll.u32 %s443_s4, 4  ;;  %s314_s24 = sshll.u32 %s444_s23, 4  ;;  %s305_s22 = int_to_ptr.vmem [resolvable:$true] %s304_s22  ;;  %s315_s24 = int_to_ptr.vmem [resolvable:$true] %s314_s24 }
   0x9   :  { %355 = vmatmul.mubr.msk.f32.vlgmr.msra.gmra.mrb[2].mxu1 %vm113_vm7, %v30_v9  ;;  %374 = vmatpush3.bf16.msra.mxu0 %v373_v13  ;;  %s391_s25 = scalar_lea.vmem %s305_s22, 32  ;;  %p396_p1 = scmp.lt.s32.totalorder %s305_s22, %s305_s22 }
   0xa   :  { %375 = vmatprep.subr.bf16.mxu0 %v442_v7  ;;  %p392_p0 = scmp.ne.s32.totalorder %s305_s22, %s391_s25  ;;  %p397_p2 = scmp.lt.s32.totalorder %s391_s25, %s391_s25 }
   0xc   :  { %p398_p3 = por %p397_p2, %p396_p1 }
   0xd   :  { %378 = vmatpush3.bf16.msk.msra.mxu0 %vm503_vm5, %v376_v15 }
   0xe   :  { %p399_p4 = pnand %p398_p3, %p392_p0 }
  0xd6   :  { %v109_v16 = vpop.f32.mrb[0].mxu1 }
  0xd7   :  { %v349_v17 = vpop.f32.mrb[1].mxu1 }
  0xdc   :  { %v187_v18 = vpop.f32.mrb[2].mxu1 }
  0xdd   :  { %v188_v20 = vadd.f32 %v187_v18, %v109_v16  ;;  %v356_v21 = vpop.f32.mrb[3].mxu1 }
  0xdf   :  { %v198_v22 = vadd.f32 %v330_v19, %v188_v20 }
  0xe1   :  { %v331_v23 = vmul.f32 -1.442695, %v198_v22 }
  0xe3   :  { %385 = vpow2.f32 %v331_v23 }
  0xed   :  { %v386_v24 = vpop.eup %385 }
  0xee   :  { %v202_v25 = vadd.f32 1.0, %v386_v24 }
  0xf0   :  { %387 = vrcp.f32 %v202_v25 }
  0xfa   :  { %v388_v26 = vpop.eup %387 }
  0xfb   :  { %366 = vmatmul.mubr.msk.f32.vlgmr.msra.gmra.mrb[0].mxu0 %vm216_vm8, %v388_v26 }
 0x1ce   :  { %v289_v28 = vpop.f32.mrb[0].mxu0 }
 0x1cf   :  { %v290_v29 = vadd.f32 %v332_v27, %v289_v28  ;;  %v367_v30 = vpop.f32.mrb[1].mxu0 }
 0x1d1   :  { %389 = vtanh.f32 %v290_v29 }
 0x1db   :  { %v390_v31 = vpop.eup %389 }
 0x1dc   :  { %295 = vst.msk [vmem:[#allocation2] sm:$0x3] %vm294_vm9, %v390_v31  ;;  %v296_v32 = vadd.f32 %v390_v31, %v30_v9 }
 0x1dd   :  { %402 = shalt.err (!%p399_p4)
}
 0x1de   :  { %s403_s27 = scalar_lea.hbm %s568_s7, 32 }
 0x1df   :  { %p404_p5 = scmp.ne.s32.totalorder %s568_s7, %s403_s27  ;;  %p407_p6 = scmp.lt.u32.totalorder %s403_s27, %s568_s7 }
 0x1e1   :  { %p409_p7 = pnand %p407_p6, %p404_p5 }
 0x1e3   :  { %412 = shalt.err (!%p409_p7)
}
 0x1e4   :  { %307 = dma.vmem_to_hbm [thread:$0]  %s305_s22, 32, %s568_s7, [#allocation3]   ;;  %297 = vst.msk [vmem:[#allocation4] sm:$0x3] %vm294_vm9, %v296_v32 }
 0x1e5   :  { %s413_s11 = scalar_lea.vmem %s315_s24, 32  ;;  %p418_p9 = scmp.lt.s32.totalorder %s315_s24, %s315_s24 }
 0x1e6   :  { %p414_p8 = scmp.ne.s32.totalorder %s315_s24, %s413_s11  ;;  %p419_p10 = scmp.lt.s32.totalorder %s413_s11, %s413_s11 }
 0x1e8   :  { %p420_p11 = por %p419_p10, %p418_p9 }
 0x1ea   :  { %p421_p12 = pnand %p420_p11, %p414_p8 }
 0x1ec   :  { %424 = shalt.err (!%p421_p12)
}
 0x1ed   :  { %s425_s13 = scalar_lea.hbm %s569_s8, 32 }
 0x1ee   :  { %p426_p13 = scmp.ne.s32.totalorder %s569_s8, %s425_s13  ;;  %p429_p0 = scmp.lt.u32.totalorder %s425_s13, %s569_s8 }
 0x1f0   :  { %p431_p1 = pnand %p429_p0, %p426_p13 }
 0x1f2   :  { %434 = shalt.err (!%p431_p1)
}
 0x1f3   :  { %317 = dma.vmem_to_hbm [thread:$0]  %s315_s24, 32, %s569_s8, [#allocation5]  }
 0x1f4   :  { %435 = dma.done.wait [#allocation3], 32  }
 0x1f5   :  { %436 = vsyncadd [#allocation3], 4294967264 }
 0x1f6   :  { %437 = dma.done.wait [#allocation5], 32  }
 0x1f7   :  { %438 = vsyncadd [#allocation5], 4294967264 }
 0x1f8   :  { %324 = vsyncpa [#allocation3], 1 }
 0x1f9   :  { %325 = vsyncpa [#allocation5], 1 }

</bundles_post_ra>
